<compile_context>
chip_gen: v7x
topology: tpu7x:2x2x1
jax: 0.10.0
libtpu: 0.0.40
codegen_flags: <defaults>
</compile_context>

<pallas_src>
import jax
import jax.numpy as jnp
from jax.experimental import pallas as pl
from jax.experimental.pallas import tpu as pltpu


def _ratio_estimator_kernel(x_ref, w1_ref, b1_ref, w2_ref, b2_ref, out_ref):
    # Hidden layer on the MXU, f32 accumulate: (TILE_B, F) @ (F, H) + (1, H).
    h = jnp.tanh(
        jnp.dot(x_ref[...], w1_ref[...], preferred_element_type=jnp.float32)
        + b1_ref[...].astype(jnp.float32)
    )
    # N=1 head as VPU multiply + lane reduce (avoids a 1-column MXU matmul).
    w2_row = w2_ref[...].astype(jnp.float32)                     # (1, H)
    log_ratios = jnp.sum(h * w2_row, axis=-1, keepdims=True)     # (TILE_B, 1)
    log_ratios = log_ratios + b2_ref[0, 0].astype(jnp.float32)   # scalar from SMEM
    # sigmoid(z) = 0.5 * (tanh(0.5 z) + 1): single EUP op, exact in f32.
    sig = 0.5 * (jnp.tanh(0.5 * log_ratios) + 1.0)
    # Fused output slab: column 0 = sigmoid(log_ratios), column 1 = log_ratios.
    out_ref[...] = jnp.concatenate([sig, log_ratios], axis=-1).astype(out_ref.dtype)


def base_ratio_estimator_forward(x, w1, b1, w2, b2, *, tile_b=4096):
    """Returns (sigmoid(log_ratios), log_ratios), both (batch, 1) float32.

    tile_b: batch rows per grid step.  4096-8192 is a good choice on v5e/v6e;
    halve it (2048-4096) on v7x (64 MiB VMEM per TensorCore).  At F=32 f32 a
    4096-row tile is ~0.5 MiB (x1 MiB double-buffered), well under every
    generation's scoped-VMEM default, so vmem_limit_bytes is left untouched.
    bf16 x/W1 are also accepted (the matmul accumulates in f32).
    """
    batch, features = x.shape
    hidden = w1.shape[1]
    w2_row = jnp.reshape(w2, (1, hidden))    # (H, 1) -> (1, H) for the VPU reduce
    b2_s = jnp.reshape(b2, (1, 1))

    # Clamp/align the batch tile (respect the (8, 128) sublane rule).
    if tile_b >= batch:
        tile_b = batch                        # single full-extent block
    else:
        tile_b = max(8, (tile_b // 8) * 8)
    if batch % tile_b:
        pad = tile_b - batch % tile_b
        x = jnp.pad(x, ((0, pad), (0, 0)))
    padded = x.shape[0]
    grid = (padded // tile_b,)

    cost = pl.CostEstimate(
        flops=2 * padded * features * hidden + 2 * padded * hidden,
        transcendentals=padded * (hidden + 1),
        bytes_accessed=(x.size * x.dtype.itemsize
                        + w1.size * w1.dtype.itemsize
                        + padded * 2 * 4),
    )

    out = pl.pallas_call(
        _ratio_estimator_kernel,
        out_shape=jax.ShapeDtypeStruct((padded, 2), jnp.float32),
        grid_spec=pltpu.PrefetchScalarGridSpec(
            num_scalar_prefetch=0,
            grid=grid,
            in_specs=[
                pl.BlockSpec((tile_b, features), lambda i: (i, 0)),   # x: streamed
                pl.BlockSpec((features, hidden), lambda i: (0, 0)),   # W1: resident
                pl.BlockSpec((1, hidden), lambda i: (0, 0)),          # b1: resident
                pl.BlockSpec((1, hidden), lambda i: (0, 0)),          # W2 row: resident
                pl.BlockSpec(memory_space=pltpu.MemorySpace.SMEM),    # b2: scalar
            ],
            out_specs=pl.BlockSpec((tile_b, 2), lambda i: (i, 0)),
        ),
        compiler_params=pltpu.CompilerParams(
            dimension_semantics=("parallel",),
        ),
        cost_estimate=cost,
    )(x, w1, b1, w2_row, b2_s)

    out = out[:batch]
    return out[:, 0:1], out[:, 1:2]


if __name__ == "__main__":
    key = jax.random.PRNGKey(0)
    batch, features, hidden = 64, 32, 32

    kx, kw1, kb1, kw2, kb2 = jax.random.split(key, 5)
    x = jax.random.normal(kx, (batch, features), dtype=jnp.float32)
    # Deterministic parameter initialization (synthetic, not a checkpoint load).
    w1 = jax.random.normal(kw1, (features, hidden), dtype=jnp.float32) * 0.1
    b1 = jax.random.normal(kb1, (1, hidden), dtype=jnp.float32) * 0.01
    w2 = jax.random.normal(kw2, (hidden, 1), dtype=jnp.float32) * 0.1
    b2 = jax.random.normal(kb2, (1, 1), dtype=jnp.float32) * 0.01

    # Small tile to exercise the multi-step batch grid in this demo.
    sig, log_ratios = base_ratio_estimator_forward(x, w1, b1, w2, b2, tile_b=16)
    jax.block_until_ready((sig, log_ratios))

    # Reference check in plain JAX (same semantics as torch forward()).
    lr_ref = jnp.tanh(x @ w1 + b1) @ w2 + b2
    sig_ref = jax.nn.sigmoid(lr_ref)
    assert log_ratios.shape == (batch, 1) and sig.shape == (batch, 1)
    assert jnp.allclose(log_ratios, lr_ref, atol=1e-5), "log_ratios mismatch"
    assert jnp.allclose(sig, sig_ref, atol=1e-5), "sigmoid mismatch"

    print("KERNEL_OK")
</pallas_src>

<mosaic_0001>
module attributes {stable_mosaic.version = 11 : i64} {
  func.func @_ratio_estimator_kernel(%arg0: i32, %arg1: memref<16x32xf32, #tpu.memory_space<vmem>>, %arg2: memref<32x32xf32, #tpu.memory_space<vmem>>, %arg3: memref<1x32xf32, #tpu.memory_space<vmem>>, %arg4: memref<1x32xf32, #tpu.memory_space<vmem>>, %arg5: memref<1x1xf32, #tpu.memory_space<smem>>, %arg6: memref<16x2xf32, #tpu.memory_space<vmem>>) attributes {dimension_semantics = [#tpu.dimension_semantics<parallel>], iteration_bounds = array<i64: 4>, scalar_prefetch = 0 : i64, scratch_operands = 0 : i64, tpu.core_type = #tpu.core_type<tc>, window_params = [{transform_indices = @transform_0, window_bounds = array<i64: 16, 32>}, {pipeline_mode = #tpu.pipeline_mode<synchronous>, transform_indices = @transform_1, window_bounds = array<i64: 32, 32>}, {pipeline_mode = #tpu.pipeline_mode<synchronous>, transform_indices = @transform_2, window_bounds = array<i64: 1, 32>}, {pipeline_mode = #tpu.pipeline_mode<synchronous>, transform_indices = @transform_3, window_bounds = array<i64: 1, 32>}, {transform_indices = @transform_4, window_bounds = array<i64: 1, 1>}, {transform_indices = @transform_5, window_bounds = array<i64: 16, 2>}]} {
    %c0 = arith.constant 0 : index
    %c0_0 = arith.constant 0 : index
    %0 = vector.load %arg1[%c0, %c0_0] : memref<16x32xf32, #tpu.memory_space<vmem>>, vector<16x32xf32>
    %c0_1 = arith.constant 0 : index
    %c0_2 = arith.constant 0 : index
    %1 = vector.load %arg2[%c0_1, %c0_2] : memref<32x32xf32, #tpu.memory_space<vmem>>, vector<32x32xf32>
    %cst = arith.constant dense<0.000000e+00> : vector<16x32xf32>
    %2 = tpu.matmul %0, %1, %cst {dimension_numbers = #tpu.dot_dimension_numbers<[1], [0], [0], [1], [0, 0, 1, 1], [], []>} : vector<16x32xf32>, vector<32x32xf32>, vector<16x32xf32> -> vector<16x32xf32>
    %c0_3 = arith.constant 0 : index
    %c0_4 = arith.constant 0 : index
    %3 = vector.load %arg3[%c0_3, %c0_4] : memref<1x32xf32, #tpu.memory_space<vmem>>, vector<1x32xf32>
    %4 = vector.broadcast %3 : vector<1x32xf32> to vector<16x32xf32>
    %5 = arith.addf %2, %4 : vector<16x32xf32>
    %6 = math.tanh %5 : vector<16x32xf32>
    %c0_5 = arith.constant 0 : index
    %c0_6 = arith.constant 0 : index
    %7 = vector.load %arg4[%c0_5, %c0_6] : memref<1x32xf32, #tpu.memory_space<vmem>>, vector<1x32xf32>
    %8 = vector.broadcast %7 : vector<1x32xf32> to vector<16x32xf32>
    %9 = arith.mulf %6, %8 : vector<16x32xf32>
    %cst_7 = arith.constant dense<0.000000e+00> : vector<16xf32>
    %10 = vector.multi_reduction <add>, %9, %cst_7 [1] : vector<16x32xf32> to vector<16xf32>
    %11 = vector.shape_cast %10 : vector<16xf32> to vector<16x1xf32>
    %c0_8 = arith.constant 0 : index
    %c0_9 = arith.constant 0 : index
    %12 = memref.load %arg5[%c0_8, %c0_9] : memref<1x1xf32, #tpu.memory_space<smem>>
    %13 = vector.broadcast %12 : f32 to vector<16x1xf32>
    %14 = arith.addf %11, %13 : vector<16x1xf32>
    %cst_10 = arith.constant 5.000000e-01 : f32
    %15 = vector.broadcast %cst_10 : f32 to vector<16x1xf32>
    %16 = arith.mulf %15, %14 : vector<16x1xf32>
    %17 = math.tanh %16 : vector<16x1xf32>
    %cst_11 = arith.constant 1.000000e+00 : f32
    %18 = vector.broadcast %cst_11 : f32 to vector<16x1xf32>
    %19 = arith.addf %17, %18 : vector<16x1xf32>
    %cst_12 = arith.constant 5.000000e-01 : f32
    %20 = vector.broadcast %cst_12 : f32 to vector<16x1xf32>
    %21 = arith.mulf %20, %19 : vector<16x1xf32>
    %22 = tpu.concatenate %21, %14 in 1 : vector<16x1xf32>, vector<16x1xf32> -> vector<16x2xf32>
    %c0_13 = arith.constant 0 : index
    %c0_14 = arith.constant 0 : index
    %23 = vector.load %arg6[%c0_13, %c0_14] : memref<16x2xf32, #tpu.memory_space<vmem>>, vector<16x2xf32>
    tpu.vector_store %arg6[%c0_13, %c0_14], %22 {strides = array<i32>} : memref<16x2xf32, #tpu.memory_space<vmem>>, vector<16x2xf32>,
    return
  }
  func.func @transform_0(%arg0: i32) -> (i32, i32) {
    %c0_i32 = arith.constant 0 : i32
    %c0_i32_0 = arith.constant 0 : i32
    return %arg0, %c0_i32 : i32, i32
  }
  func.func @transform_1(%arg0: i32) -> (i32, i32) {
    %c0_i32 = arith.constant 0 : i32
    %c0_i32_0 = arith.constant 0 : i32
    %c0_i32_1 = arith.constant 0 : i32
    return %c0_i32, %c0_i32_0 : i32, i32
  }
  func.func @transform_2(%arg0: i32) -> (i32, i32) {
    %c0_i32 = arith.constant 0 : i32
    %c0_i32_0 = arith.constant 0 : i32
    %c0_i32_1 = arith.constant 0 : i32
    return %c0_i32, %c0_i32_0 : i32, i32
  }
  func.func @transform_3(%arg0: i32) -> (i32, i32) {
    %c0_i32 = arith.constant 0 : i32
    %c0_i32_0 = arith.constant 0 : i32
    %c0_i32_1 = arith.constant 0 : i32
    return %c0_i32, %c0_i32_0 : i32, i32
  }
  func.func @transform_4(%arg0: i32) -> (i32, i32) {
    %c0_i32 = arith.constant 0 : i32
    %c0_i32_0 = arith.constant 0 : i32
    %c0_i32_1 = arith.constant 0 : i32
    return %c0_i32, %c0_i32_0 : i32, i32
  }
  func.func @transform_5(%arg0: i32) -> (i32, i32) {
    %c0_i32 = arith.constant 0 : i32
    %c0_i32_0 = arith.constant 0 : i32
    return %arg0, %c0_i32 : i32, i32
  }
}

</mosaic_0001>

<bundles_post_ra>
// kernel: tpu_custom_call.1
= control target key start
LH: loop header
LB: loop body
LE: loop exit
PB: predicated region body
PF: predicated region fallthrough
CT: control target
= control target key end

     0   :  { %s512_s20 = smov 0   ;;  %s558_s0 = inlined_call_operand.vmem [shape: f32[64,32], index: 0, kind: input, shape index: {}]   ;;  %s559_s1 = inlined_call_operand.vmem [shape: f32[32,32], index: 1, kind: input, shape index: {}]   ;;  %s560_s2 = inlined_call_operand.vmem [shape: f32[1,32], index: 2, kind: input, shape index: {}]   ;;  %s561_s3 = inlined_call_operand.vmem [shape: f32[1,32], index: 3, kind: input, shape index: {}]   ;;  %s562_s4 = inlined_call_operand.<no memory space> [shape: f32[1,1], index: 4, kind: input, shape index: {}]   ;;  %s563_s5 = inlined_call_operand.vmem [shape: f32[64,2], index: 5, kind: output, shape index: {}]  }
   0x1   :  { %10 = sst [smem:[#allocation2]] %s562_s4 }
   0x2 LB: > { %s415_s21 = sadd.s32 4294967295, %s477_s20   ;;  %p419_p0 = scmp.ge.s32.totalorder %s477_s20, 1  ;;  %s477_s20 = sphi %s512_s20, %s16_s20  }
   0x3   : > { %p189_p1 = scmp.lt.s32.totalorder %s477_s20, 5 }
   0x5   : > { %p190_p2 = pnand %p419_p0, %p189_p1 }
   0x6   : > { %v231_v0 = vld [vmem:[%s559_s1] sm:$0xff] (!%p190_p2)  ;;  %v232_v1 = vld [vmem:[%s559_s1 + $0x8] sm:$0xff] (!%p190_p2)  ;;  %v233_v2 = vld [vmem:[%s559_s1 + $0x10] sm:$0xff] (!%p190_p2)  ;;  %s420_s27 = sshll.u32 (!%p190_p2), %s415_s21, 1  ;;  %vm242_vm0 = vcmask (!%p190_p2), 261120   ;;  %s341_s13 = sld [smem:[#allocation2]] (!%p190_p2) }
   0x7   : > { %193 = sbr.rel (%p190_p2) target bundleno = 415 (0x19f), region = 40  ;;  %v447_v3 = vpack.c.bf16 (!%p190_p2), %v232_v1, %v231_v0  ;;  %v234_v4 = vld [vmem:[%s559_s1 + $0x18] sm:$0xff] (!%p190_p2)  ;;  %p218_p3 = scmp.lt.s32.totalorder (!%p190_p2), %s420_s27, 7  ;;  %v424_v8 = vld [vmem:[%s560_s2] ss:$0 sm:$0xff] (!%p190_p2)  ;;  %vm353_vm1 = vcmask (!%p190_p2), 7168  }
   0x8   : > { %v451_v5 = vpack.c.bf16 (!%p190_p2), %v234_v4, %v233_v2  ;;  %v427_v13 = vld [vmem:[%s561_s3] ss:$0 sm:$0xff] (!%p190_p2)  ;;  %vm356_vm2 = vcmask (!%p190_p2), 15360  }
   0x9   : > { %448 = vmatprep.subr.bf16.mxu0 (!%p190_p2), %v447_v3 }
   0xa   : > { %450 = vmatpush3.bf16.msra.mxu0 (!%p190_p2), %v447_v3 }
   0xb   : > { %452 = vmatprep.subr.bf16.mxu0 (!%p190_p2), %v451_v5 }
   0xc   : > { %v342_v20 = vstv (!%p190_p2), %s341_s13 }
   0xe   : > { %s565_s27 = smov (!%p218_p3, %s420_s27), 7  ;;  %454 = vmatpush3.bf16.msra.mxu0 %v451_v5 }
   0xf   : > { %s421_s30 = sshll.u32 %s565_s27, 3 }
  0x10   : > { %s221_s8 = scalar_lea.vmem %s558_s0, %s421_s30  ;;  %s227_s16 = scalar_lea.vmem %s563_s5, %s421_s30 }
  0x11   : > { %v229_v6 = vld [vmem:[%s221_s8] sm:$0xff]  ;;  %v230_v7 = vld [vmem:[%s221_s8 + $0x8] sm:$0xff] }
  0x12   : > { %444 = vmatprep.mubr.msk.f32.mxu0 %vm242_vm0, %v229_v6 }
  0x13   : > { %445 = vmatmul.mubr.msk.f32.vlgmr.msra.gmra.mrb[0].mxu0 %vm242_vm0, %v230_v7 }
  0xe6   : > { %v446_v9 = vpop.f32.mrb[0].mxu0 }
  0xe7   : > { %v321_v10 = vadd.f32 %v446_v9, %v424_v8  ;;  %v315_v11 = vpop.f32.mrb[1].mxu0 }
  0xe8   : > { %v316_v12 = vadd.f32 %v424_v8, %v315_v11 }
  0xe9   : > { %463 = vtanh.f32 %v321_v10 }
  0xea   : > { %465 = vtanh.f32 %v316_v12 }
  0xf3   : > { %v464_v14 = vpop.eup %463 }
  0xf4   : > { %v466_v15 = vpop.eup %465  ;;  %v334_v18 = vmul.f32 %v464_v14, %v427_v13 }
  0xf5   : > { %v333_v16 = vmul.f32 %v466_v15, %v427_v13 }
  0xf6   : > { %v338_v19 = vsel %vm242_vm0, %v334_v18, 0.0 }
  0xf7   : > { %v335_v17 = vsel %vm242_vm0, %v333_v16, 0.0 }
  0xf8   : > { %336 = vadd.xlane.f32.xlu0 %v335_v17 }
  0xfc   : > { %339 = vadd.xlane.f32.xlu0 %v338_v19 }
 0x185   : > { %v337_v21 = vpop.xlane.xlu0 %336 }
 0x186   : > { %v343_v22 = vadd.f32 %v342_v20, %v337_v21 }
 0x188   : > { %v345_v23 = vmul.f32 0.5, %v343_v22 }
 0x189   : > { %v340_v24 = vpop.xlane.xlu0 %339 }
 0x18a   : > { %467 = vtanh.f32 %v345_v23  ;;  %v344_v25 = vadd.f32 %v342_v20, %v340_v24 }
 0x18c   : > { %v346_v26 = vmul.f32 0.5, %v344_v25 }
 0x18e   : > { %469 = vtanh.f32 %v346_v26 }
 0x194   : > { %v468_v27 = vpop.eup %467 }
 0x195   : > { %v349_v28 = vadd.f32 1.0, %v468_v27 }
 0x197   : > { %v351_v29 = vmul.f32 0.5, %v349_v28 }
 0x198   : > { %v470_v30 = vpop.eup %469 }
 0x199   : > { %v354_v31 = vsel %vm353_vm1, %v351_v29, %v343_v22  ;;  %v350_v32 = vadd.f32 1.0, %v470_v30 }
 0x19a   : > { %357 = vst.msk [vmem:[%s227_s16] sm:$0xff] %vm356_vm2, %v354_v31 }
 0x19b   : > { %v352_v33 = vmul.f32 0.5, %v350_v32 }
 0x19d   : > { %v355_v34 = vsel %vm353_vm1, %v352_v33, %v344_v25 }
 0x19e   : > { %358 = vst.msk [vmem:[%s227_s16 + $0x8] sm:$0xff] %vm356_vm2, %v355_v34 }
 0x19f PF: > { %s16_s20 = sadd.s32 1, %s477_s20  }
 0x1a0   : > { %p13_p4 = scmp.ge.s32.totalorder %s16_s20, 6  }
 0x1a2   :  { %15 = sbr.rel (!%p13_p4) target bundleno = 2 (0x2), region = 70 }

</bundles_post_ra>
